<compile_context>
chip_gen: v7x
topology: tpu7x:2x2x1
jax: 0.10.0
libtpu: 0.0.40
codegen_flags: <defaults>
</compile_context>

<pallas_src>
import functools

import jax
import jax.numpy as jnp
from jax.experimental import pallas as pl
from jax.experimental.pallas import tpu as pltpu

LANE = 128      # lane width  (last dim granularity, f32)
SUBLANE = 8     # sublane width (second-to-last dim granularity, f32)


def _round_up(n: int, m: int) -> int:
    return ((n + m - 1) // m) * m


def mlp_kernel(x_ref, w1_ref, b1_ref, w2_ref, b2_ref, w3_ref, b3_ref, o_ref):
    # Layer 1: Linear + ReLU (f32 MXU accumulation)
    h = jnp.dot(x_ref[...], w1_ref[...], preferred_element_type=jnp.float32)
    h = jnp.maximum(h + b1_ref[...], 0.0)
    # Layer 2: Linear + ReLU
    h = jnp.dot(h, w2_ref[...], preferred_element_type=jnp.float32)
    h = jnp.maximum(h + b2_ref[...], 0.0)
    # Layer 3: Linear (no activation)
    h = jnp.dot(h, w3_ref[...], preferred_element_type=jnp.float32)
    o_ref[...] = (h + b3_ref[...]).astype(o_ref.dtype)


@functools.partial(jax.jit, static_argnames=("out_features",))
def neural_net_forward(x, padded_params, out_features):
    """x: [B, input_size] f32.

    padded_params: dict of lane-padded w1,b1,w2,b2,w3,b3
                   (w: [in_p, out_p], b: [1, out_p], all dims multiples of 128).
    out_features:  logical (unpadded) output size.
    """
    w1, b1, w2, b2, w3, b3 = (
        padded_params[k] for k in ("w1", "b1", "w2", "b2", "w3", "b3")
    )
    B, F = x.shape
    in_p, hid_p = w1.shape
    out_p = w3.shape[1]

    # Batch tiling: one grid step per block_m rows; weights stay VMEM-resident.
    block_m = min(512, _round_up(B, SUBLANE))
    b_pad = _round_up(B, block_m)

    # Lane-dense, sublane-aligned input (zero padding keeps semantics exact:
    # padded input features hit zero weight rows, padded hidden units have zero
    # weights/biases, padded output columns are sliced off below).
    x_pad = jnp.zeros((b_pad, in_p), x.dtype).at[:B, :F].set(x)

    flops = 2 * b_pad * (in_p * hid_p + hid_p * hid_p + hid_p * out_p)
    bytes_accessed = 4 * (
        x_pad.size + w1.size + b1.size + w2.size + b2.size + w3.size + b3.size
        + b_pad * out_p
    )

    out = pl.pallas_call(
        mlp_kernel,
        out_shape=jax.ShapeDtypeStruct((b_pad, out_p), jnp.float32),
        grid=(b_pad // block_m,),
        in_specs=[
            pl.BlockSpec((block_m, in_p), lambda i: (i, 0)),   # x tile per step
            pl.BlockSpec((in_p, hid_p), lambda i: (0, 0)),     # w1 resident
            pl.BlockSpec((1, hid_p), lambda i: (0, 0)),        # b1 resident
            pl.BlockSpec((hid_p, hid_p), lambda i: (0, 0)),    # w2 resident
            pl.BlockSpec((1, hid_p), lambda i: (0, 0)),        # b2 resident
            pl.BlockSpec((hid_p, out_p), lambda i: (0, 0)),    # w3 resident
            pl.BlockSpec((1, out_p), lambda i: (0, 0)),        # b3 resident
        ],
        out_specs=pl.BlockSpec((block_m, out_p), lambda i: (i, 0)),
        compiler_params=pltpu.CompilerParams(
            dimension_semantics=("parallel",),
        ),
        cost_estimate=pl.CostEstimate(
            flops=flops, transcendentals=0, bytes_accessed=bytes_accessed
        ),
    )(x_pad, w1, b1, w2, b2, w3, b3)

    # Slice away batch and lane padding outside the kernel.
    return out[:B, :out_features]


def init_params(key, input_size, hidden_size, output_size):
    """Deterministic init mimicking nn.Linear's U(-1/sqrt(fan_in), 1/sqrt(fan_in))."""
    ks = jax.random.split(key, 6)

    def linear(kw, kb, fan_in, fan_out):
        bound = 1.0 / jnp.sqrt(fan_in)
        w = jax.random.uniform(kw, (fan_in, fan_out), jnp.float32, -bound, bound)
        b = jax.random.uniform(kb, (1, fan_out), jnp.float32, -bound, bound)
        return w, b

    w1, b1 = linear(ks[0], ks[1], input_size, hidden_size)
    w2, b2 = linear(ks[2], ks[3], hidden_size, hidden_size)
    w3, b3 = linear(ks[4], ks[5], hidden_size, output_size)
    return {"w1": w1, "b1": b1, "w2": w2, "b2": b2, "w3": w3, "b3": b3}


def pad_params(params, input_size, hidden_size, output_size):
    """Zero-pad every feature dim up to a multiple of 128 (done once, offline)."""
    in_p = _round_up(input_size, LANE)
    hid_p = _round_up(hidden_size, LANE)
    out_p = _round_up(output_size, LANE)

    def pad2(a, rows, cols):
        return jnp.zeros((rows, cols), a.dtype).at[: a.shape[0], : a.shape[1]].set(a)

    # TODO(synk): for production sizes on v6e/v7x, also store a bf16 copy of the
    # weights (f32 accumulation in the kernel) to halve weight DMA and use the
    # native MXU dtype; kept f32 here to match the PyTorch reference bitwise-tight.
    return {
        "w1": pad2(params["w1"], in_p, hid_p),
        "b1": pad2(params["b1"], 1, hid_p),
        "w2": pad2(params["w2"], hid_p, hid_p),
        "b2": pad2(params["b2"], 1, hid_p),
        "w3": pad2(params["w3"], hid_p, out_p),
        "b3": pad2(params["b3"], 1, out_p),
    }


if __name__ == "__main__":
    INPUT_SIZE, HIDDEN_SIZE, OUTPUT_SIZE = 32, 64, 16
    BATCH = 64  # multiple of 8 (sublane) to avoid sublane padding

    key = jax.random.PRNGKey(0)
    k_x, k_p = jax.random.split(key)
    x = jax.random.normal(k_x, (BATCH, INPUT_SIZE), dtype=jnp.float32)

    params = init_params(k_p, INPUT_SIZE, HIDDEN_SIZE, OUTPUT_SIZE)
    padded = pad_params(params, INPUT_SIZE, HIDDEN_SIZE, OUTPUT_SIZE)

    out = neural_net_forward(x, padded, OUTPUT_SIZE)
    out = jax.block_until_ready(out)

    # Pure-JAX reference check against the unpadded parameters.
    def ref(x, p):
        h = jnp.maximum(x @ p["w1"] + p["b1"], 0.0)
        h = jnp.maximum(h @ p["w2"] + p["b2"], 0.0)
        return h @ p["w3"] + p["b3"]

    expected = ref(x, params)
    assert out.shape == (BATCH, OUTPUT_SIZE)
    assert jnp.allclose(out, expected, atol=1e-5, rtol=1e-5)

    print("KERNEL_OK")
</pallas_src>

<mosaic_0001>
module attributes {stable_mosaic.version = 11 : i64} {
  func.func @mlp_kernel(%arg0: i32, %arg1: memref<64x128xf32, #tpu.memory_space<vmem>>, %arg2: memref<128x128xf32, #tpu.memory_space<vmem>>, %arg3: memref<1x128xf32, #tpu.memory_space<vmem>>, %arg4: memref<128x128xf32, #tpu.memory_space<vmem>>, %arg5: memref<1x128xf32, #tpu.memory_space<vmem>>, %arg6: memref<128x128xf32, #tpu.memory_space<vmem>>, %arg7: memref<1x128xf32, #tpu.memory_space<vmem>>, %arg8: memref<64x128xf32, #tpu.memory_space<vmem>>) attributes {dimension_semantics = [#tpu.dimension_semantics<parallel>], iteration_bounds = array<i64: 1>, scalar_prefetch = 0 : i64, scratch_operands = 0 : i64, tpu.core_type = #tpu.core_type<tc>, window_params = [{transform_indices = @transform_0, window_bounds = array<i64: 64, 128>}, {pipeline_mode = #tpu.pipeline_mode<synchronous>, transform_indices = @transform_1, window_bounds = array<i64: 128, 128>}, {pipeline_mode = #tpu.pipeline_mode<synchronous>, transform_indices = @transform_2, window_bounds = array<i64: 1, 128>}, {pipeline_mode = #tpu.pipeline_mode<synchronous>, transform_indices = @transform_3, window_bounds = array<i64: 128, 128>}, {pipeline_mode = #tpu.pipeline_mode<synchronous>, transform_indices = @transform_4, window_bounds = array<i64: 1, 128>}, {pipeline_mode = #tpu.pipeline_mode<synchronous>, transform_indices = @transform_5, window_bounds = array<i64: 128, 128>}, {pipeline_mode = #tpu.pipeline_mode<synchronous>, transform_indices = @transform_6, window_bounds = array<i64: 1, 128>}, {transform_indices = @transform_7, window_bounds = array<i64: 64, 128>}]} {
    %c0 = arith.constant 0 : index
    %c0_0 = arith.constant 0 : index
    %0 = vector.load %arg1[%c0, %c0_0] : memref<64x128xf32, #tpu.memory_space<vmem>>, vector<64x128xf32>
    %c0_1 = arith.constant 0 : index
    %c0_2 = arith.constant 0 : index
    %1 = vector.load %arg2[%c0_1, %c0_2] : memref<128x128xf32, #tpu.memory_space<vmem>>, vector<128x128xf32>
    %cst = arith.constant dense<0.000000e+00> : vector<64x128xf32>
    %2 = tpu.matmul %0, %1, %cst {dimension_numbers = #tpu.dot_dimension_numbers<[1], [0], [0], [1], [0, 0, 1, 1], [], []>} : vector<64x128xf32>, vector<128x128xf32>, vector<64x128xf32> -> vector<64x128xf32>
    %c0_3 = arith.constant 0 : index
    %c0_4 = arith.constant 0 : index
    %3 = vector.load %arg3[%c0_3, %c0_4] : memref<1x128xf32, #tpu.memory_space<vmem>>, vector<1x128xf32>
    %4 = vector.broadcast %3 : vector<1x128xf32> to vector<64x128xf32>
    %5 = arith.addf %2, %4 : vector<64x128xf32>
    %cst_5 = arith.constant 0.000000e+00 : f32
    %6 = vector.broadcast %cst_5 : f32 to vector<64x128xf32>
    %7 = arith.maximumf %5, %6 : vector<64x128xf32>
    %c0_6 = arith.constant 0 : index
    %c0_7 = arith.constant 0 : index
    %8 = vector.load %arg4[%c0_6, %c0_7] : memref<128x128xf32, #tpu.memory_space<vmem>>, vector<128x128xf32>
    %cst_8 = arith.constant dense<0.000000e+00> : vector<64x128xf32>
    %9 = tpu.matmul %7, %8, %cst_8 {dimension_numbers = #tpu.dot_dimension_numbers<[1], [0], [0], [1], [0, 0, 1, 1], [], []>} : vector<64x128xf32>, vector<128x128xf32>, vector<64x128xf32> -> vector<64x128xf32>
    %c0_9 = arith.constant 0 : index
    %c0_10 = arith.constant 0 : index
    %10 = vector.load %arg5[%c0_9, %c0_10] : memref<1x128xf32, #tpu.memory_space<vmem>>, vector<1x128xf32>
    %11 = vector.broadcast %10 : vector<1x128xf32> to vector<64x128xf32>
    %12 = arith.addf %9, %11 : vector<64x128xf32>
    %cst_11 = arith.constant 0.000000e+00 : f32
    %13 = vector.broadcast %cst_11 : f32 to vector<64x128xf32>
    %14 = arith.maximumf %12, %13 : vector<64x128xf32>
    %c0_12 = arith.constant 0 : index
    %c0_13 = arith.constant 0 : index
    %15 = vector.load %arg6[%c0_12, %c0_13] : memref<128x128xf32, #tpu.memory_space<vmem>>, vector<128x128xf32>
    %cst_14 = arith.constant dense<0.000000e+00> : vector<64x128xf32>
    %16 = tpu.matmul %14, %15, %cst_14 {dimension_numbers = #tpu.dot_dimension_numbers<[1], [0], [0], [1], [0, 0, 1, 1], [], []>} : vector<64x128xf32>, vector<128x128xf32>, vector<64x128xf32> -> vector<64x128xf32>
    %c0_15 = arith.constant 0 : index
    %c0_16 = arith.constant 0 : index
    %17 = vector.load %arg7[%c0_15, %c0_16] : memref<1x128xf32, #tpu.memory_space<vmem>>, vector<1x128xf32>
    %18 = vector.broadcast %17 : vector<1x128xf32> to vector<64x128xf32>
    %19 = arith.addf %16, %18 : vector<64x128xf32>
    %c0_17 = arith.constant 0 : index
    %c0_18 = arith.constant 0 : index
    %20 = vector.load %arg8[%c0_17, %c0_18] : memref<64x128xf32, #tpu.memory_space<vmem>>, vector<64x128xf32>
    tpu.vector_store %arg8[%c0_17, %c0_18], %19 {strides = array<i32>} : memref<64x128xf32, #tpu.memory_space<vmem>>, vector<64x128xf32>,
    return
  }
  func.func @transform_0(%arg0: i32) -> (i32, i32) {
    %c0_i32 = arith.constant 0 : i32
    %c0_i32_0 = arith.constant 0 : i32
    return %arg0, %c0_i32 : i32, i32
  }
  func.func @transform_1(%arg0: i32) -> (i32, i32) {
    %c0_i32 = arith.constant 0 : i32
    %c0_i32_0 = arith.constant 0 : i32
    %c0_i32_1 = arith.constant 0 : i32
    return %c0_i32, %c0_i32_0 : i32, i32
  }
  func.func @transform_2(%arg0: i32) -> (i32, i32) {
    %c0_i32 = arith.constant 0 : i32
    %c0_i32_0 = arith.constant 0 : i32
    %c0_i32_1 = arith.constant 0 : i32
    return %c0_i32, %c0_i32_0 : i32, i32
  }
  func.func @transform_3(%arg0: i32) -> (i32, i32) {
    %c0_i32 = arith.constant 0 : i32
    %c0_i32_0 = arith.constant 0 : i32
    %c0_i32_1 = arith.constant 0 : i32
    return %c0_i32, %c0_i32_0 : i32, i32
  }
  func.func @transform_4(%arg0: i32) -> (i32, i32) {
    %c0_i32 = arith.constant 0 : i32
    %c0_i32_0 = arith.constant 0 : i32
    %c0_i32_1 = arith.constant 0 : i32
    return %c0_i32, %c0_i32_0 : i32, i32
  }
  func.func @transform_5(%arg0: i32) -> (i32, i32) {
    %c0_i32 = arith.constant 0 : i32
    %c0_i32_0 = arith.constant 0 : i32
    %c0_i32_1 = arith.constant 0 : i32
    return %c0_i32, %c0_i32_0 : i32, i32
  }
  func.func @transform_6(%arg0: i32) -> (i32, i32) {
    %c0_i32 = arith.constant 0 : i32
    %c0_i32_0 = arith.constant 0 : i32
    %c0_i32_1 = arith.constant 0 : i32
    return %c0_i32, %c0_i32_0 : i32, i32
  }
  func.func @transform_7(%arg0: i32) -> (i32, i32) {
    %c0_i32 = arith.constant 0 : i32
    %c0_i32_0 = arith.constant 0 : i32
    return %arg0, %c0_i32 : i32, i32
  }
}

</mosaic_0001>

<bundles_post_ra>
// kernel: neural_net_forward.1
= control target key start
LH: loop header
LB: loop body
LE: loop exit
PB: predicated region body
PF: predicated region fallthrough
CT: control target
= control target key end

     0   :  { %12 = vsyncpa [#allocation3], 0  ;;  %s807_s24 = smov [#allocation2]   ;;  %s1015_s0 = inlined_call_operand.vmem [shape: f32[64,128], index: 0, kind: input, shape index: {}]   ;;  %s1016_s1 = inlined_call_operand.vmem [shape: f32[128,128], index: 1, kind: input, shape index: {}]   ;;  %s1017_s2 = inlined_call_operand.vmem [shape: f32[1,128], index: 2, kind: input, shape index: {}]   ;;  %s1018_s3 = inlined_call_operand.vmem [shape: f32[128,128], index: 3, kind: input, shape index: {}]   ;;  %s1019_s4 = inlined_call_operand.vmem [shape: f32[1,128], index: 4, kind: input, shape index: {}]   ;;  %s1020_s5 = inlined_call_operand.hbm [shape: f32[128,128], index: 5, kind: input, shape index: {}]   ;;  %s1021_s6 = inlined_call_operand.vmem [shape: f32[1,128], index: 6, kind: input, shape index: {}]   ;;  %s1022_s7 = inlined_call_operand.vmem [shape: f32[64,128], index: 7, kind: output, shape index: {}]  }
   0x1   :  { %s28_s25 = sshll.u32 %s807_s24, 4  ;;  %s783_s28 = scalar_lea.hbm %s1020_s5, 2048  ;;  %s29_s25 = int_to_ptr.vmem [resolvable:$true] %s28_s25 }
   0x2   :  { %p784_p0 = scmp.ne.s32.totalorder %s1020_s5, %s783_s28  ;;  %p787_p1 = scmp.lt.u32.totalorder %s783_s28, %s1020_s5 }
   0x4   :  { %p789_p2 = pnand %p787_p1, %p784_p0 }
   0x6   :  { %792 = shalt.err (!%p789_p2)
}
   0x7   :  { %s793_s10 = scalar_lea.vmem %s29_s25, 2048  ;;  %p798_p4 = scmp.lt.s32.totalorder %s29_s25, %s29_s25 }
   0x8   :  { %p794_p3 = scmp.ne.s32.totalorder %s29_s25, %s793_s10  ;;  %p799_p5 = scmp.lt.s32.totalorder %s793_s10, %s793_s10 }
   0xa   :  { %p800_p6 = por %p799_p5, %p798_p4 }
   0xc   :  { %p801_p7 = pnand %p800_p6, %p794_p3 }
   0xe   :  { %804 = shalt.err (!%p801_p7)
}
   0xf   :  { %s808_s11 = smov 128   ;;  %s809_s12 = smov 8  }
  0x10   :  { %34 = dma.hbm_to_vmem [thread:$0]  %s1020_s5, 2048, %s29_s25, [#allocation3], %s808_s11, %s808_s11, %s809_s12  }
  0x11   :  { %805 = dma.done.wait [#allocation3], 2048  }
  0x12   :  { %806 = vsyncadd [#allocation3], 4294965248  ;;  %v48_v0 = vld [vmem:[%s1016_s1] sm:$0xff]  ;;  %v49_v1 = vld [vmem:[%s1016_s1 + $0x8] sm:$0xff] }
  0x13   :  { %v50_v2 = vld [vmem:[%s1016_s1 + $0x10] sm:$0xff]  ;;  %v668_v3 = vpack.c.bf16 %v49_v1, %v48_v0  ;;  %v51_v4 = vld [vmem:[%s1016_s1 + $0x18] sm:$0xff]  ;;  %v52_v6 = vld [vmem:[%s1016_s1 + $0x20] sm:$0xff] }
  0x14   :  { %v672_v5 = vpack.c.bf16 %v51_v4, %v50_v2  ;;  %v53_v7 = vld [vmem:[%s1016_s1 + $0x28] sm:$0xff]  ;;  %v40_v9 = vld [vmem:[%s1015_s0] sm:$0xff]  ;;  %v54_v10 = vld [vmem:[%s1016_s1 + $0x30] sm:$0xff] }
  0x15   :  { %669 = vmatprep.subr.bf16.mxu0 %v668_v3  ;;  %v676_v8 = vpack.c.bf16 %v53_v7, %v52_v6  ;;  %v55_v11 = vld [vmem:[%s1016_s1 + $0x38] sm:$0xff]  ;;  %568 = vmatprep.mubr.f32.mxu0 %v40_v9  ;;  %v184_v12 = vld [vmem:[%s1018_s3] sm:$0xff]  ;;  %v185_v13 = vld [vmem:[%s1018_s3 + $0x8] sm:$0xff] }
  0x16   :  { %671 = vmatpush3.bf16.msra.mxu0 %v668_v3  ;;  %v186_v14 = vld [vmem:[%s1018_s3 + $0x10] sm:$0xff]  ;;  %v680_v15 = vpack.c.bf16 %v55_v11, %v54_v10  ;;  %v56_v16 = vld [vmem:[%s1016_s1 + $0x40] sm:$0xff]  ;;  %v700_v17 = vpack.c.bf16 %v185_v13, %v184_v12  ;;  %v187_v18 = vld [vmem:[%s1018_s3 + $0x18] sm:$0xff] }
  0x17   :  { %673 = vmatprep.subr.bf16.mxu0 %v672_v5  ;;  %v57_v19 = vld [vmem:[%s1016_s1 + $0x48] sm:$0xff]  ;;  %v704_v20 = vpack.c.bf16 %v187_v18, %v186_v14  ;;  %v188_v21 = vld [vmem:[%s1018_s3 + $0x20] sm:$0xff]  ;;  %v58_v24 = vld [vmem:[%s1016_s1 + $0x50] sm:$0xff] }
  0x18   :  { %v189_v22 = vld [vmem:[%s1018_s3 + $0x28] sm:$0xff]  ;;  %701 = vmatprep.subr.bf16.mxu1 %v700_v17  ;;  %v684_v23 = vpack.c.bf16 %v57_v19, %v56_v16  ;;  %v59_v26 = vld [vmem:[%s1016_s1 + $0x58] sm:$0xff]  ;;  %v190_v27 = vld [vmem:[%s1018_s3 + $0x30] sm:$0xff] }
  0x19   :  { %703 = vmatpush3.bf16.msra.mxu1 %v700_v17  ;;  %v708_v25 = vpack.c.bf16 %v189_v22, %v188_v21  ;;  %v191_v28 = vld [vmem:[%s1018_s3 + $0x38] sm:$0xff]  ;;  %v688_v29 = vpack.c.bf16 %v59_v26, %v58_v24  ;;  %v60_v30 = vld [vmem:[%s1016_s1 + $0x60] sm:$0xff]  ;;  %v61_v32 = vld [vmem:[%s1016_s1 + $0x68] sm:$0xff] }
  0x1a   :  { %675 = vmatpush3.bf16.msra.mxu0 %v672_v5  ;;  %705 = vmatprep.subr.bf16.mxu1 %v704_v20  ;;  %v712_v31 = vpack.c.bf16 %v191_v28, %v190_v27  ;;  %v192_v33 = vld [vmem:[%s1018_s3 + $0x40] sm:$0xff]  ;;  %v193_v34 = vld [vmem:[%s1018_s3 + $0x48] sm:$0xff]  ;;  %v692_v35 = vpack.c.bf16 %v61_v32, %v60_v30  ;;  %v62_v36 = vld [vmem:[%s1016_s1 + $0x70] sm:$0xff] }
  0x1b   :  { %677 = vmatprep.subr.bf16.mxu0 %v676_v8  ;;  %v716_v37 = vpack.c.bf16 %v193_v34, %v192_v33  ;;  %v63_v38 = vld [vmem:[%s1016_s1 + $0x78] sm:$0xff]  ;;  %v194_v39 = vld [vmem:[%s1018_s3 + $0x50] sm:$0xff]  ;;  %v196_v43 = vld [vmem:[%s1018_s3 + $0x60] sm:$0xff] }
  0x1c   :  { %v195_v40 = vld [vmem:[%s1018_s3 + $0x58] sm:$0xff]  ;;  %v696_v41 = vpack.c.bf16 %v63_v38, %v62_v36  ;;  %v197_v44 = vld [vmem:[%s1018_s3 + $0x68] sm:$0xff]  ;;  %v42_v47 = vld [vmem:[%s1015_s0 + $0x10] sm:$0xff] }
  0x1d   :  { %707 = vmatpush3.bf16.msra.mxu1 %v704_v20  ;;  %v720_v42 = vpack.c.bf16 %v195_v40, %v194_v39  ;;  %v724_v45 = vpack.c.bf16 %v197_v44, %v196_v43  ;;  %v41_v46 = vld [vmem:[%s1015_s0 + $0x8] sm:$0xff]  ;;  %v43_v48 = vld [vmem:[%s1015_s0 + $0x18] sm:$0xff]  ;;  %v44_v49 = vld [vmem:[%s1015_s0 + $0x20] sm:$0xff] }
  0x1e   :  { %679 = vmatpush3.bf16.msra.mxu0 %v676_v8  ;;  %709 = vmatprep.subr.bf16.mxu1 %v708_v25  ;;  %v45_v50 = vld [vmem:[%s1015_s0 + $0x28] sm:$0xff]  ;;  %v46_v51 = vld [vmem:[%s1015_s0 + $0x30] sm:$0xff]  ;;  %v47_v52 = vld [vmem:[%s1015_s0 + $0x38] sm:$0xff] }
  0x1f   :  { %681 = vmatprep.subr.bf16.mxu0 %v680_v15  ;;  %v198_v53 = vld [vmem:[%s1018_s3 + $0x70] sm:$0xff]  ;;  %v199_v54 = vld [vmem:[%s1018_s3 + $0x78] sm:$0xff]  ;;  %v320_v56 = vld [vmem:[#allocation2] sm:$0xff] }
  0x20   :  { %v728_v55 = vpack.c.bf16 %v199_v54, %v198_v53  ;;  %v321_v57 = vld [vmem:[#allocation2 + $0x8] sm:$0xff]  ;;  %v322_v58 = vld [vmem:[#allocation2 + $0x10] sm:$0xff]  ;;  %v323_v60 = vld [vmem:[#allocation2 + $0x18] sm:$0xff] }
  0x21   :  { %711 = vmatpush3.bf16.msra.mxu1 %v708_v25  ;;  %v732_v59 = vpack.c.bf16 %v321_v57, %v320_v56  ;;  %v736_v61 = vpack.c.bf16 %v323_v60, %v322_v58  ;;  %v324_v62 = vld [vmem:[#allocation2 + $0x20] sm:$0xff]  ;;  %v325_v63 = vld [vmem:[#allocation2 + $0x28] sm:$0xff]  ;;  %v326_v1 = vld [vmem:[#allocation2 + $0x30] sm:$0xff] }
  0x22   :  { %683 = vmatpush3.bf16.msra.mxu0 %v680_v15  ;;  %713 = vmatprep.subr.bf16.mxu1 %v712_v31  ;;  %v740_v0 = vpack.c.bf16 %v325_v63, %v324_v62  ;;  %v327_v2 = vld [vmem:[#allocation2 + $0x38] sm:$0xff]  ;;  %v328_v4 = vld [vmem:[#allocation2 + $0x40] sm:$0xff]  ;;  %v329_v5 = vld [vmem:[#allocation2 + $0x48] sm:$0xff] }
  0x23   :  { %685 = vmatprep.subr.bf16.mxu0 %v684_v23  ;;  %v744_v3 = vpack.c.bf16 %v327_v2, %v326_v1  ;;  %v748_v6 = vpack.c.bf16 %v329_v5, %v328_v4  ;;  %v330_v7 = vld [vmem:[#allocation2 + $0x50] sm:$0xff]  ;;  %v331_v8 = vld [vmem:[#allocation2 + $0x58] sm:$0xff]  ;;  %v332_v10 = vld [vmem:[#allocation2 + $0x60] sm:$0xff] }
  0x24   :  { %v752_v9 = vpack.c.bf16 %v331_v8, %v330_v7  ;;  %v333_v11 = vld [vmem:[#allocation2 + $0x68] sm:$0xff]  ;;  %v461_v13 = vld [vmem:[%s1017_s2] ss:$0 sm:$0xff]  ;;  %v334_v38 = vld [vmem:[#allocation2 + $0x70] sm:$0xff] }
  0x25   :  { %715 = vmatpush3.bf16.msra.mxu1 %v712_v31  ;;  %v756_v12 = vpack.c.bf16 %v333_v11, %v332_v10  ;;  %v335_v39 = vld [vmem:[#allocation2 + $0x78] sm:$0xff]  ;;  %v463_v2 = vld [vmem:[%s1021_s6] ss:$0 sm:$0xff] }
  0x26   :  { %687 = vmatpush3.bf16.msra.mxu0 %v684_v23  ;;  %717 = vmatprep.subr.bf16.mxu1 %v716_v37  ;;  %v760_v40 = vpack.c.bf16 %v335_v39, %v334_v38 }
  0x27   :  { %689 = vmatprep.subr.bf16.mxu0 %v688_v29 }
  0x29   :  { %719 = vmatpush3.bf16.msra.mxu1 %v716_v37 }
  0x2a   :  { %691 = vmatpush3.bf16.msra.mxu0 %v688_v29  ;;  %721 = vmatprep.subr.bf16.mxu1 %v720_v42 }
  0x2b   :  { %693 = vmatprep.subr.bf16.mxu0 %v692_v35 }
  0x2d   :  { %723 = vmatpush3.bf16.msra.mxu1 %v720_v42 }
  0x2e   :  { %695 = vmatpush3.bf16.msra.mxu0 %v692_v35  ;;  %725 = vmatprep.subr.bf16.mxu1 %v724_v45 }
  0x2f   :  { %697 = vmatprep.subr.bf16.mxu0 %v696_v41 }
  0x31   :  { %727 = vmatpush3.bf16.msra.mxu1 %v724_v45 }
  0x32   :  { %699 = vmatpush3.bf16.msra.mxu0 %v696_v41  ;;  %729 = vmatprep.subr.bf16.mxu1 %v728_v55  ;;  %v462_v41 = vld [vmem:[%s1019_s4] ss:$0 sm:$0xff] }
  0x33   :  { %733 = vmatprep.subr.bf16.mxu0 %v732_v59 }
  0x35   :  { %569 = vmatmul.mubr.f32.vlgmr.msra.gmra.mrb[0].mxu0 %v41_v46  ;;  %731 = vmatpush3.bf16.msra.mxu1 %v728_v55 }
  0x36   :  { %571 = vmatprep.mubr.f32.mxu0 %v42_v47  ;;  %764 = vmatprep.subr.bf16.mxu1 %v732_v59 }
  0x37   :  { %735 = vmatpush3.bf16.msra.mxu0 %v732_v59 }
  0x38   :  { %737 = vmatprep.subr.bf16.mxu0 %v736_v61 }
  0x39   :  { %572 = vmatmul.mubr.f32.gmra.mrb[2].mxu0 %v43_v48 }
  0x3a   :  { %574 = vmatprep.mubr.f32.mxu0 %v44_v49 }
  0x3b   :  { %739 = vmatpush3.bf16.msra.mxu0 %v736_v61 }
  0x3c   :  { %741 = vmatprep.subr.bf16.mxu0 %v740_v0 }
  0x3d   :  { %575 = vmatmul.mubr.f32.gmra.mrb[4].mxu0 %v45_v50 }
  0x3e   :  { %577 = vmatprep.mubr.f32.mxu0 %v46_v51 }
  0x3f   :  { %743 = vmatpush3.bf16.msra.mxu0 %v740_v0 }
  0x40   :  { %745 = vmatprep.subr.bf16.mxu0 %v744_v3 }
  0x41   :  { %578 = vmatmul.mubr.f32.gmra.mrb[6].mxu0 %v47_v52 }
  0x43   :  { %747 = vmatpush3.bf16.msra.mxu0 %v744_v3 }
  0x44   :  { %749 = vmatprep.subr.bf16.mxu0 %v748_v6 }
  0x47   :  { %751 = vmatpush3.bf16.msra.mxu0 %v748_v6 }
  0x48   :  { %753 = vmatprep.subr.bf16.mxu0 %v752_v9 }
  0x4b   :  { %755 = vmatpush3.bf16.msra.mxu0 %v752_v9 }
  0x4c   :  { %757 = vmatprep.subr.bf16.mxu0 %v756_v12 }
  0x4f   :  { %759 = vmatpush3.bf16.msra.mxu0 %v756_v12 }
  0x50   :  { %761 = vmatprep.subr.bf16.mxu0 %v760_v40 }
  0x53   :  { %763 = vmatpush3.bf16.msra.mxu0 %v760_v40 }
 0x108   :  { %v570_v14 = vpop.f32.mrb[0].mxu0 }
 0x109   :  { %v143_v15 = vadd.f32 %v570_v14, %v461_v13  ;;  %v137_v16 = vpop.f32.mrb[1].mxu0 }
 0x10a   :  { %v138_v17 = vadd.f32 %v461_v13, %v137_v16 }
 0x10b   :  { %v177_v20 = vmax.f32 %v143_v15, 0.0 }
 0x10c   :  { %v573_v18 = vpop.f32.mrb[2].mxu0  ;;  %v176_v19 = vmax.f32 %v138_v17, 0.0 }
 0x10d   :  { %v153_v21 = vadd.f32 %v573_v18, %v461_v13  ;;  %v147_v22 = vpop.f32.mrb[3].mxu0 }
 0x10e   :  { %v148_v23 = vadd.f32 %v461_v13, %v147_v22  ;;  %612 = vmatprep.mubr.f32.mxu1 %v176_v19 }
 0x10f   :  { %613 = vmatmul.mubr.f32.vlgmr.msra.gmra.mrb[0].mxu1 %v177_v20  ;;  %v179_v26 = vmax.f32 %v153_v21, 0.0 }
 0x110   :  { %v178_v24 = vmax.f32 %v148_v23, 0.0  ;;  %v576_v25 = vpop.f32.mrb[4].mxu0  ;;  %772 = vmatpush3.bf16.msra.mxu1 %v732_v59 }
 0x111   :  { %v163_v27 = vadd.f32 %v576_v25, %v461_v13  ;;  %v157_v28 = vpop.f32.mrb[5].mxu0  ;;  %765 = vmatprep.subr.bf16.mxu1 %v736_v61 }
 0x112   :  { %v158_v29 = vadd.f32 %v461_v13, %v157_v28  ;;  %615 = vmatprep.mubr.f32.mxu1 %v178_v24 }
 0x113   :  { %616 = vmatmul.mubr.f32.gmra.mrb[2].mxu1 %v179_v26  ;;  %v181_v32 = vmax.f32 %v163_v27, 0.0 }
 0x114   :  { %v180_v30 = vmax.f32 %v158_v29, 0.0  ;;  %v579_v31 = vpop.f32.mrb[6].mxu0  ;;  %773 = vmatpush3.bf16.msra.mxu1 %v736_v61 }
 0x115   :  { %v173_v33 = vadd.f32 %v579_v31, %v461_v13  ;;  %v167_v34 = vpop.f32.mrb[7].mxu0  ;;  %766 = vmatprep.subr.bf16.mxu1 %v740_v0 }
 0x116   :  { %v168_v35 = vadd.f32 %v461_v13, %v167_v34  ;;  %618 = vmatprep.mubr.f32.mxu1 %v180_v30 }
 0x117   :  { %619 = vmatmul.mubr.f32.gmra.mrb[4].mxu1 %v181_v32  ;;  %v183_v37 = vmax.f32 %v173_v33, 0.0 }
 0x118   :  { %v182_v36 = vmax.f32 %v168_v35, 0.0  ;;  %774 = vmatpush3.bf16.msra.mxu1 %v740_v0 }
 0x119   :  { %767 = vmatprep.subr.bf16.mxu1 %v744_v3 }
 0x11a   :  { %621 = vmatprep.mubr.f32.mxu1 %v182_v36 }
 0x11b   :  { %622 = vmatmul.mubr.f32.gmra.mrb[6].mxu1 %v183_v37 }
 0x11c   :  { %775 = vmatpush3.bf16.msra.mxu1 %v744_v3 }
 0x11d   :  { %768 = vmatprep.subr.bf16.mxu1 %v748_v6 }
 0x120   :  { %776 = vmatpush3.bf16.msra.mxu1 %v748_v6 }
 0x121   :  { %769 = vmatprep.subr.bf16.mxu1 %v752_v9 }
 0x124   :  { %777 = vmatpush3.bf16.msra.mxu1 %v752_v9 }
 0x125   :  { %770 = vmatprep.subr.bf16.mxu1 %v756_v12 }
 0x128   :  { %778 = vmatpush3.bf16.msra.mxu1 %v756_v12 }
 0x129   :  { %771 = vmatprep.subr.bf16.mxu1 %v760_v40 }
 0x12c   :  { %779 = vmatpush3.bf16.msra.mxu1 %v760_v40 }
 0x1e2   :  { %v614_v42 = vpop.f32.mrb[0].mxu1 }
 0x1e3   :  { %v279_v43 = vadd.f32 %v614_v42, %v462_v41  ;;  %v273_v44 = vpop.f32.mrb[1].mxu1 }
 0x1e4   :  { %v274_v45 = vadd.f32 %v462_v41, %v273_v44 }
 0x1e5   :  { %v313_v48 = vmax.f32 %v279_v43, 0.0 }
 0x1e6   :  { %v312_v46 = vmax.f32 %v274_v45, 0.0  ;;  %v617_v47 = vpop.f32.mrb[2].mxu1 }
 0x1e7   :  { %v289_v49 = vadd.f32 %v617_v47, %v462_v41  ;;  %v283_v50 = vpop.f32.mrb[3].mxu1 }
 0x1e8   :  { %v284_v51 = vadd.f32 %v462_v41, %v283_v50  ;;  %656 = vmatprep.mubr.f32.mxu0 %v312_v46 }
 0x1e9   :  { %657 = vmatmul.mubr.f32.vlgmr.msra.gmra.mrb[8].mxu0 %v313_v48  ;;  %v315_v54 = vmax.f32 %v289_v49, 0.0 }
 0x1ea   :  { %v314_v52 = vmax.f32 %v284_v51, 0.0  ;;  %v620_v53 = vpop.f32.mrb[4].mxu1 }
 0x1eb   :  { %v299_v55 = vadd.f32 %v620_v53, %v462_v41  ;;  %v293_v56 = vpop.f32.mrb[5].mxu1 }
 0x1ec   :  { %v294_v57 = vadd.f32 %v462_v41, %v293_v56  ;;  %659 = vmatprep.mubr.f32.mxu0 %v314_v52 }
 0x1ed   :  { %660 = vmatmul.mubr.f32.gmra.mrb[10].mxu0 %v315_v54  ;;  %v317_v60 = vmax.f32 %v299_v55, 0.0 }
 0x1ee   :  { %v316_v58 = vmax.f32 %v294_v57, 0.0  ;;  %v623_v59 = vpop.f32.mrb[6].mxu1 }
 0x1ef   :  { %v309_v61 = vadd.f32 %v623_v59, %v462_v41  ;;  %v303_v62 = vpop.f32.mrb[7].mxu1 }
 0x1f0   :  { %v304_v63 = vadd.f32 %v462_v41, %v303_v62  ;;  %662 = vmatprep.mubr.f32.mxu1 %v316_v58 }
 0x1f1   :  { %663 = vmatmul.mubr.f32.vlgmr.msra.gmra.mrb[8].mxu1 %v317_v60  ;;  %v319_v1 = vmax.f32 %v309_v61, 0.0 }
 0x1f2   :  { %v318_v0 = vmax.f32 %v304_v63, 0.0 }
 0x1f4   :  { %665 = vmatprep.mubr.f32.mxu1 %v318_v0 }
 0x1f5   :  { %666 = vmatmul.mubr.f32.gmra.mrb[10].mxu1 %v319_v1 }
 0x2bc   :  { %v658_v3 = vpop.f32.mrb[8].mxu0 }
 0x2bd   :  { %v415_v4 = vadd.f32 %v658_v3, %v463_v2  ;;  %v409_v5 = vpop.f32.mrb[9].mxu0 }
 0x2be   :  { %v410_v6 = vadd.f32 %v463_v2, %v409_v5 }
 0x2bf   :  { %449 = vst [vmem:[%s1022_s7 + $0x8] sm:$0xff] %v415_v4 }
 0x2c0   :  { %448 = vst [vmem:[%s1022_s7] sm:$0xff] %v410_v6  ;;  %v661_v7 = vpop.f32.mrb[10].mxu0 }
 0x2c1   :  { %v425_v8 = vadd.f32 %v661_v7, %v463_v2  ;;  %v419_v9 = vpop.f32.mrb[11].mxu0 }
 0x2c2   :  { %v420_v10 = vadd.f32 %v463_v2, %v419_v9 }
 0x2c3   :  { %451 = vst [vmem:[%s1022_s7 + $0x18] sm:$0xff] %v425_v8 }
 0x2c4   :  { %450 = vst [vmem:[%s1022_s7 + $0x10] sm:$0xff] %v420_v10  ;;  %v664_v11 = vpop.f32.mrb[8].mxu1 }
 0x2c5   :  { %v435_v12 = vadd.f32 %v664_v11, %v463_v2  ;;  %v429_v13 = vpop.f32.mrb[9].mxu1 }
 0x2c6   :  { %v430_v14 = vadd.f32 %v463_v2, %v429_v13 }
 0x2c7   :  { %453 = vst [vmem:[%s1022_s7 + $0x28] sm:$0xff] %v435_v12 }
 0x2c8   :  { %452 = vst [vmem:[%s1022_s7 + $0x20] sm:$0xff] %v430_v14  ;;  %v667_v15 = vpop.f32.mrb[10].mxu1 }
 0x2c9   :  { %v445_v16 = vadd.f32 %v667_v15, %v463_v2  ;;  %v439_v17 = vpop.f32.mrb[11].mxu1 }
 0x2ca   :  { %v440_v18 = vadd.f32 %v463_v2, %v439_v17 }
 0x2cb   :  { %455 = vst [vmem:[%s1022_s7 + $0x38] sm:$0xff] %v445_v16 }
 0x2cc   :  { %454 = vst [vmem:[%s1022_s7 + $0x30] sm:$0xff] %v440_v18 }
 0x2cd   :  { %460 = vsyncpa [#allocation3], 1 }

</bundles_post_ra>
